<compile_context>
chip_gen: v7x
topology: tpu7x:2x2x1
jax: 0.10.0
libtpu: 0.0.40
codegen_flags: <defaults>
</compile_context>

<pallas_src>
import functools

import jax
import jax.numpy as jnp
from jax.experimental import pallas as pl
from jax.experimental.pallas import tpu as pltpu

_PAIRWISE_EPS = 1e-6                    # F.pairwise_distance default eps
_VMEM_BUDGET_BYTES = 36 * 1024 * 1024   # total footprint budget (fits v7x 64 MiB physical)
_VMEM_LIMIT_BYTES = 48 * 1024 * 1024    # explicit scoped-VMEM ceiling, valid on v5e/v6e/v7x
_SMALL_TILE_BYTES = 1 * 1024 * 1024     # below this payload, deepen input buffering


def _round_up(x, m):
    return ((x + m - 1) // m) * m


def _contrastive_loss_kernel(x1_ref, x2_ref, lm_ref, out_ref, *, batch_size, tile_b):
    i = pl.program_id(0)

    # Embeddings arrive in their HBM dtype; upcast in-register (cheap VPU work).
    # TODO(synk): on v6e/v7x a bf16-native subtract (single upcast of `diff`)
    # would trim one cast per element, but it changes numerics vs the f32
    # reference (eps added to a bf16-rounded difference), so keep f32 here.
    x1 = x1_ref[...].astype(jnp.float32)                 # (TB, D)
    x2 = x2_ref[...].astype(jnp.float32)                 # (TB, D)
    diff = x1 - x2 + _PAIRWISE_EPS
    d2 = jnp.sum(diff * diff, axis=-1, keepdims=True)    # (TB, 1) squared distance
    d = jnp.sqrt(d2)                                     # only needed for margin term

    lm = lm_ref[...].astype(jnp.float32)                 # (TB, 2) fused [labels, margins]
    labels = lm[:, 0:1]
    margins = lm[:, 1:2]

    positive_loss = labels * d2                          # == labels * d**2
    clamped = jnp.maximum(margins - d, 0.0)
    negative_loss = (1.0 - labels) * (clamped * clamped)
    per_row = positive_loss + negative_loss              # (TB, 1)

    # Mask rows of a ragged / padded final tile so garbage never hits the sum.
    # NOTE: keep this mask on per_row (after all elementwise math), not on d2.
    row_ids = i * tile_b + jax.lax.broadcasted_iota(jnp.int32, (tile_b, 1), 0)
    per_row = jnp.where(row_ids < batch_size, per_row, 0.0)

    partial = jnp.sum(per_row)
    # Lane-dense 128-wide output slot per grid step (unmasked vst).
    out_ref[...] = jnp.broadcast_to(partial, (1, 128)).astype(jnp.float32)


def _pick_tile_b(batch_size, feature_dim, itemsize):
    """Largest multiple-of-8 batch tile under the full VMEM footprint budget.

    Per-row bytes accounted:
      2 streams x 2 buffers x D x itemsize   (pipelined embedding input tiles)
      + ~3 x D x 4                           (f32 upcast / diff / diff^2 temporaries)
      + 2 buffers x 128 x 4                  (labels/margins tile, lane-padded to 128)
    """
    per_row = (2 * 2 * feature_dim * itemsize) + (3 * feature_dim * 4) + (2 * 128 * 4)
    tb = _VMEM_BUDGET_BYTES // max(1, per_row)
    tb = max(8, (tb // 8) * 8)
    # v7x megacore: keep at least 2 grid steps so both TensorCores stream tiles.
    if batch_size > 8:
        tb = min(tb, _round_up(pl.cdiv(batch_size, 2), 8))
    return min(tb, _round_up(batch_size, 8))


def contrastive_loss(outputs1, outputs2, labels, margins, *, tile_b=None):
    """Pallas TPU implementation of ContrastiveLoss.forward (returns scalar mean loss)."""
    B, D = outputs1.shape
    # Fuse the two per-sample scalars into one (B, 2) stream (one DMA per tile).
    lm = jnp.stack(
        [labels.reshape(B).astype(jnp.float32), margins.reshape(B).astype(jnp.float32)],
        axis=-1,
    )

    itemsize = jnp.dtype(outputs1.dtype).itemsize
    if tile_b is None:
        tile_b = _pick_tile_b(B, D, itemsize)
    grid_b = pl.cdiv(B, tile_b)

    # Deep prefetch only when per-step compute is trivial (small tiles) and the
    # grid is long enough to fill the pipeline; budget already has headroom for
    # the extra buffer (< 2 MiB in this regime).
    tile_bytes = tile_b * D * itemsize
    emb_pipeline = (
        pl.Buffered(3) if (tile_bytes < _SMALL_TILE_BYTES and grid_b >= 4) else None
    )

    kernel = functools.partial(_contrastive_loss_kernel, batch_size=B, tile_b=tile_b)

    partials = pl.pallas_call(
        kernel,
        out_shape=jax.ShapeDtypeStruct((1, 128 * grid_b), jnp.float32),
        grid=(grid_b,),
        in_specs=[
            pl.BlockSpec((tile_b, D), lambda i: (i, 0), pipeline_mode=emb_pipeline),
            pl.BlockSpec((tile_b, D), lambda i: (i, 0), pipeline_mode=emb_pipeline),
            pl.BlockSpec((tile_b, 2), lambda i: (i, 0)),  # fused labels/margins tile
        ],
        out_specs=pl.BlockSpec((1, 128), lambda i: (0, i)),  # per-tile partial sums
        compiler_params=pltpu.CompilerParams(
            dimension_semantics=("parallel",),  # independent tiles -> megacore-friendly
            vmem_limit_bytes=_VMEM_LIMIT_BYTES,
        ),
    )(outputs1, outputs2, lm)

    per_tile = partials.reshape(grid_b, 128)[:, 0]
    return jnp.sum(per_tile) / jnp.float32(B)


def _reference_loss(outputs1, outputs2, labels, margins):
    """Pure-JAX reference mirroring the PyTorch module exactly."""
    diff = outputs1.astype(jnp.float32) - outputs2.astype(jnp.float32) + _PAIRWISE_EPS
    d = jnp.sqrt(jnp.sum(diff * diff, axis=-1))
    pos = labels * d**2
    neg = (1.0 - labels) * jnp.maximum(margins - d, 0.0) ** 2
    return jnp.mean(pos + neg)


if __name__ == "__main__":
    key = jax.random.PRNGKey(0)

    # --- Main check: small batch of embedding pairs (single tile path). ---
    k1, k2, k3, k4 = jax.random.split(key, 4)
    B, D = 8, 32
    outputs1 = jax.random.normal(k1, (B, D), dtype=jnp.float32)
    outputs2 = jax.random.normal(k2, (B, D), dtype=jnp.float32)
    labels = jax.random.bernoulli(k3, 0.5, (B,)).astype(jnp.float32)
    margins = 1.0 + jax.random.uniform(k4, (B,), dtype=jnp.float32)

    loss = contrastive_loss(outputs1, outputs2, labels, margins)
    jax.block_until_ready(loss)
    ref = _reference_loss(outputs1, outputs2, labels, margins)
    assert jnp.allclose(loss, ref, rtol=1e-5, atol=1e-5), (loss, ref)

    # --- Second check: ragged batch + many small tiles (Buffered(3) + mask path). ---
    k5, k6, k7, k8 = jax.random.split(jax.random.PRNGKey(1), 4)
    B2, D2 = 44, 32
    o1 = jax.random.normal(k5, (B2, D2), dtype=jnp.float32)
    o2 = jax.random.normal(k6, (B2, D2), dtype=jnp.float32)
    lb = jax.random.bernoulli(k7, 0.5, (B2,)).astype(jnp.float32)
    mg = 1.0 + jax.random.uniform(k8, (B2,), dtype=jnp.float32)

    loss2 = contrastive_loss(o1, o2, lb, mg, tile_b=8)   # grid of 6, ragged last tile
    jax.block_until_ready(loss2)
    ref2 = _reference_loss(o1, o2, lb, mg)
    assert jnp.allclose(loss2, ref2, rtol=1e-5, atol=1e-5), (loss2, ref2)

    print("KERNEL_OK")
</pallas_src>

<mosaic_0001>
module attributes {stable_mosaic.version = 11 : i64} {
  func.func @_contrastive_loss_kernel(%arg0: i32, %arg1: memref<8x32xf32, #tpu.memory_space<vmem>>, %arg2: memref<8x32xf32, #tpu.memory_space<vmem>>, %arg3: memref<8x2xf32, #tpu.memory_space<vmem>>, %arg4: memref<1x128xf32, #tpu.memory_space<vmem>>) attributes {dimension_semantics = [#tpu.dimension_semantics<parallel>], iteration_bounds = array<i64: 1>, scalar_prefetch = 0 : i64, scratch_operands = 0 : i64, tpu.core_type = #tpu.core_type<tc>, window_params = [{transform_indices = @transform_0, window_bounds = array<i64: 8, 32>}, {transform_indices = @transform_1, window_bounds = array<i64: 8, 32>}, {transform_indices = @transform_2, window_bounds = array<i64: 8, 2>}, {transform_indices = @transform_3, window_bounds = array<i64: 1, 128>}]} {
    %c0 = arith.constant 0 : index
    %c0_0 = arith.constant 0 : index
    %0 = vector.load %arg1[%c0, %c0_0] : memref<8x32xf32, #tpu.memory_space<vmem>>, vector<8x32xf32>
    %c0_1 = arith.constant 0 : index
    %c0_2 = arith.constant 0 : index
    %1 = vector.load %arg2[%c0_1, %c0_2] : memref<8x32xf32, #tpu.memory_space<vmem>>, vector<8x32xf32>
    %2 = arith.subf %0, %1 : vector<8x32xf32>
    %cst = arith.constant 9.99999997E-7 : f32
    %3 = vector.broadcast %cst : f32 to vector<8x32xf32>
    %4 = arith.addf %2, %3 : vector<8x32xf32>
    %5 = arith.mulf %4, %4 : vector<8x32xf32>
    %cst_3 = arith.constant dense<0.000000e+00> : vector<8xf32>
    %6 = vector.multi_reduction <add>, %5, %cst_3 [1] : vector<8x32xf32> to vector<8xf32>
    %7 = vector.shape_cast %6 : vector<8xf32> to vector<8x1xf32>
    %8 = math.sqrt %7 : vector<8x1xf32>
    %c0_4 = arith.constant 0 : index
    %c0_5 = arith.constant 0 : index
    %9 = vector.load %arg3[%c0_4, %c0_5] : memref<8x2xf32, #tpu.memory_space<vmem>>, vector<8x2xf32>
    %10 = vector.extract_strided_slice %9 {offsets = [0, 0], sizes = [8, 1], strides = [1, 1]} : vector<8x2xf32> to vector<8x1xf32>
    %11 = vector.extract_strided_slice %9 {offsets = [0, 1], sizes = [8, 1], strides = [1, 1]} : vector<8x2xf32> to vector<8x1xf32>
    %12 = arith.mulf %10, %7 : vector<8x1xf32>
    %13 = arith.subf %11, %8 : vector<8x1xf32>
    %cst_6 = arith.constant 0.000000e+00 : f32
    %14 = vector.broadcast %cst_6 : f32 to vector<8x1xf32>
    %15 = arith.maximumf %13, %14 : vector<8x1xf32>
    %cst_7 = arith.constant 1.000000e+00 : f32
    %16 = vector.broadcast %cst_7 : f32 to vector<8x1xf32>
    %17 = arith.subf %16, %10 : vector<8x1xf32>
    %18 = arith.mulf %15, %15 : vector<8x1xf32>
    %19 = arith.mulf %17, %18 : vector<8x1xf32>
    %20 = arith.addf %12, %19 : vector<8x1xf32>
    %c8_i32 = arith.constant 8 : i32
    %21 = arith.muli %arg0, %c8_i32 : i32
    %22 = tpu.iota {dimensions = array<i32: 0>} : vector<8x1xi32>
    %23 = vector.broadcast %21 : i32 to vector<8x1xi32>
    %24 = arith.addi %23, %22 : vector<8x1xi32>
    %c8_i32_8 = arith.constant 8 : i32
    %25 = vector.broadcast %c8_i32_8 : i32 to vector<8x1xi32>
    %26 = arith.cmpi slt, %24, %25 : vector<8x1xi32>
    %cst_9 = arith.constant 0.000000e+00 : f32
    %27 = vector.broadcast %cst_9 : f32 to vector<8x1xf32>
    %28 = arith.select %26, %20, %27 : vector<8x1xi1>, vector<8x1xf32>
    %29 = vector.shape_cast %28 : vector<8x1xf32> to vector<1x8x1xf32>
    %cst_10 = arith.constant dense<0.000000e+00> : vector<1xf32>
    %30 = vector.multi_reduction <add>, %29, %cst_10 [1, 2] : vector<1x8x1xf32> to vector<1xf32>
    %31 = vector.shape_cast %30 : vector<1xf32> to vector<1x1x1xf32>
    %32 = vector.extract %31[0, 0, 0] : f32 from vector<1x1x1xf32>
    %33 = vector.broadcast %32 : f32 to vector<1x128xf32>
    %c0_11 = arith.constant 0 : index
    %c0_12 = arith.constant 0 : index
    %34 = vector.load %arg4[%c0_11, %c0_12] : memref<1x128xf32, #tpu.memory_space<vmem>>, vector<1x128xf32>
    tpu.vector_store %arg4[%c0_11, %c0_12], %33 {strides = array<i32>} : memref<1x128xf32, #tpu.memory_space<vmem>>, vector<1x128xf32>,
    return
  }
  func.func @transform_0(%arg0: i32) -> (i32, i32) {
    %c0_i32 = arith.constant 0 : i32
    %c0_i32_0 = arith.constant 0 : i32
    return %arg0, %c0_i32 : i32, i32
  }
  func.func @transform_1(%arg0: i32) -> (i32, i32) {
    %c0_i32 = arith.constant 0 : i32
    %c0_i32_0 = arith.constant 0 : i32
    return %arg0, %c0_i32 : i32, i32
  }
  func.func @transform_2(%arg0: i32) -> (i32, i32) {
    %c0_i32 = arith.constant 0 : i32
    %c0_i32_0 = arith.constant 0 : i32
    return %arg0, %c0_i32 : i32, i32
  }
  func.func @transform_3(%arg0: i32) -> (i32, i32) {
    %c0_i32 = arith.constant 0 : i32
    %c0_i32_0 = arith.constant 0 : i32
    return %c0_i32, %arg0 : i32, i32
  }
}

</mosaic_0001>

<bundles_post_ra>
// kernel: tpu_custom_call.1
= control target key start
LH: loop header
LB: loop body
LE: loop exit
PB: predicated region body
PF: predicated region fallthrough
CT: control target
= control target key end

     0   :  { %8 = vsyncpa [#allocation3], 0  ;;  %s198_s0 = inlined_call_operand.vmem [shape: f32[8,32], index: 0, kind: input, shape index: {}]   ;;  %s199_s1 = inlined_call_operand.hbm [shape: f32[8,32], index: 1, kind: input, shape index: {}]   ;;  %s200_s2 = inlined_call_operand.vmem [shape: f32[8,2], index: 2, kind: input, shape index: {}]   ;;  %s201_s3 = inlined_call_operand.hbm [shape: f32[1,128], index: 3, kind: output, shape index: {}]  }
   0x1   :  { %9 = vsyncpa [#allocation4], 0  ;;  %s145_s12 = smov [#allocation2]   ;;  %s97_s16 = scalar_lea.hbm %s199_s1, 128 }
   0x2   :  { %s18_s13 = sshll.u32 %s145_s12, 4  ;;  %p98_p0 = scmp.ne.s32.totalorder %s199_s1, %s97_s16  ;;  %s19_s13 = int_to_ptr.vmem [resolvable:$true] %s18_s13 }
   0x3   :  { %p101_p1 = scmp.lt.u32.totalorder %s97_s16, %s199_s1 }
   0x5   :  { %p103_p2 = pnand %p101_p1, %p98_p0 }
   0x7   :  { %106 = shalt.err (!%p103_p2)
}
   0x8   :  { %s107_s21 = scalar_lea.vmem %s19_s13, 128  ;;  %p112_p4 = scmp.lt.s32.totalorder %s19_s13, %s19_s13 }
   0x9   :  { %p108_p3 = scmp.ne.s32.totalorder %s19_s13, %s107_s21  ;;  %p113_p5 = scmp.lt.s32.totalorder %s107_s21, %s107_s21 }
   0xb   :  { %p114_p6 = por %p113_p5, %p112_p4 }
   0xd   :  { %p115_p7 = pnand %p114_p6, %p108_p3 }
   0xf   :  { %118 = shalt.err (!%p115_p7)
}
  0x10   :  { %21 = dma.hbm_to_vmem [thread:$0]  %s199_s1, 128, %s19_s13, [#allocation3]  }
  0x11   :  { %141 = dma.done.wait [#allocation3], 128  }
  0x12   :  { %142 = vsyncadd [#allocation3], 4294967168  ;;  %v27_v0 = vld [vmem:[%s198_s0] sm:$0xff]  ;;  %vm32_vm0 = vcmask 261120   ;;  %s146_s0 = smov 127   ;;  %vm62_vm3 = vcmask 7168  }
  0x13   :  { %v28_v1 = vld [vmem:[#allocation2] sm:$0xff] }
  0x14   :  { %v29_v2 = vsub.f32 %v27_v0, %v28_v1  ;;  %v43_v12 = vld [vmem:[%s200_s2] sm:$0xff]  ;;  %s147_s2 = smov [#allocation5]  }
  0x15   :  { %v47_v16 = vsub.f32 1.0, %v43_v12  ;;  %s81_s27 = sshll.u32 %s147_s2, 4  ;;  %s82_s27 = int_to_ptr.vmem [resolvable:$true] %s81_s27 }
  0x16   :  { %v30_v3 = vadd.f32 1e-06, %v29_v2  ;;  %s119_s29 = scalar_lea.vmem %s82_s27, 16  ;;  %s123_s30 = scalar_lea.vmem %s82_s27, 32 }
  0x17   :  { %p120_p8 = scmp.ne.s32.totalorder %s82_s27, %s119_s29  ;;  %p124_p9 = scmp.lt.s32.totalorder %s82_s27, %s82_s27 }
  0x18   :  { %v31_v4 = vmul.f32 %v30_v3, %v30_v3  ;;  %p125_p10 = scmp.lt.s32.totalorder %s123_s30, %s119_s29 }
  0x1a   :  { %v33_v5 = vsel %vm32_vm0, %v31_v4, 0.0  ;;  %p126_p11 = por %p125_p10, %p124_p9 }
  0x1b   :  { %34 = vadd.xlane.f32.xlu0 %v33_v5 }
  0x1c   :  { %p127_p12 = pnand %p126_p11, %p120_p8 }
  0xa8   :  { %v35_v6 = vpop.xlane.xlu0 %34 }
  0xa9   :  { %95 = vrsqrt.f32 %v35_v6  ;;  %vm38_vm1 = vcmp.eq.f32.partialorder %v35_v6, inf  ;;  %v41_v9 = vand.u32 2147483648, %v35_v6  ;;  %vm40_vm2 = vcmp.eq.f32.partialorder %v35_v6, 0.0 }
  0xaa   :  { %v44_v19 = vmul.f32 %v43_v12, %v35_v6 }
  0xb3   :  { %v96_v7 = vpop.eup %95 }
  0xb4   :  { %v37_v8 = vmul.f32 %v96_v7, %v35_v6 }
  0xb6   :  { %v39_v10 = vsel %vm38_vm1, %v35_v6, %v37_v8 }
  0xb7   :  { %v42_v11 = vsel %vm40_vm2, %v41_v9, %v39_v10 }
  0xb8   :  { %v45_v13 = vsub.f32 %v43_v12, %v42_v11 }
  0xba   :  { %v46_v14 = vmax.f32 %v45_v13, 0.0 }
  0xbc   :  { %v48_v15 = vmul.f32 %v46_v14, %v46_v14 }
  0xbe   :  { %50 = vrot.lane.b32.xlu0 %v48_v15, %s146_s0 }
 0x130   :  { %v51_v17 = vpop.permute.xlu0 %50 }
 0x131   :  { %v53_v18 = vmul.f32 %v51_v17, %v47_v16 }
 0x133   :  { %v54_v20 = vadd.f32 %v53_v18, %v44_v19 }
 0x135   :  { %v63_v21 = vsel %vm62_vm3, %v54_v20, 0.0 }
 0x136   :  { %64 = vadd.xlane.f32.xlu1 %v63_v21 }
 0x1c3   :  { %v65_v22 = vpop.xlane.xlu1 %64 }
 0x1c4   :  { %v66_v23 = vrot.slane %v65_v22, 4 }
 0x1c6   :  { %v67_v24 = vadd.f32 %v66_v23, %v65_v22 }
 0x1c8   :  { %v68_v25 = vrot.slane %v67_v24, 2 }
 0x1ca   :  { %v69_v26 = vadd.f32 %v68_v25, %v67_v24 }
 0x1cc   :  { %v70_v27 = vrot.slane %v69_v26, 1 }
 0x1ce   :  { %v71_v28 = vadd.f32 %v70_v27, %v69_v26 }
 0x1d0   :  { %90 = vpush %v71_v28 }
 0x201   :  { %s91_s28 = spop %90 }
 0x202   :  { %v73_v29 = vstv %s91_s28 }
 0x203   :  { %74 = vst [vmem:[#allocation5] sm:$0x1] %v73_v29 }
 0x204   :  { %130 = shalt.err (!%p127_p12)
}
 0x205   :  { %s131_s6 = scalar_lea.hbm %s201_s3, 16 }
 0x206   :  { %p132_p13 = scmp.ne.s32.totalorder %s201_s3, %s131_s6  ;;  %p135_p0 = scmp.lt.u32.totalorder %s131_s6, %s201_s3 }
 0x208   :  { %p137_p1 = pnand %p135_p0, %p132_p13 }
 0x20a   :  { %140 = shalt.err (!%p137_p1)
}
 0x20b   :  { %84 = dma.vmem_to_hbm [thread:$0]  %s82_s27, 16, %s201_s3, [#allocation4]  }
 0x20c   :  { %143 = dma.done.wait [#allocation4], 16  }
 0x20d   :  { %144 = vsyncadd [#allocation4], 4294967280 }
 0x20e   :  { %88 = vsyncpa [#allocation3], 1 }
 0x20f   :  { %89 = vsyncpa [#allocation4], 1 }

</bundles_post_ra>
